<compile_context>
chip_gen: v5e
topology: v5e:2x2
jax: 0.10.0
libtpu: 0.0.40
codegen_flags: <defaults>
</compile_context>

<pallas_src>
import functools

import jax
import jax.numpy as jnp
from jax.experimental import pallas as pl
from jax.experimental.pallas import tpu as pltpu


def _scale_mul_kernel(x_ref, s_ref, o_ref):
    """x_ref: (B, TN) waveform tile; s_ref: (1, TN) scale tile (f32)."""
    # (1, TN) broadcasts across the B sublane rows; everything else is a single
    # vmul per vreg, so the kernel is pure HBM-roofline.
    o_ref[...] = (x_ref[...] * s_ref[...]).astype(o_ref.dtype)


@functools.lru_cache(maxsize=64)
def _volume_scale(n, k):
    """cos(arange(n)/k)**2 as a (1, n) f32 array, cached per (n, k)."""
    idx = jnp.arange(n, dtype=jnp.float32)
    s = jnp.cos(idx / jnp.float32(k))
    return (s * s).reshape(1, n)


def adjust_volumn(x, k=100000.0, *, vmem_budget_bytes=24 * 1024 * 1024):
    """x: (B, N) waveform batch. Returns x * cos(arange(N)/k)**2."""
    assert x.ndim == 2, "expected (batch, num_samples)"
    B, N = x.shape

    # Precomputed / cached scale, streamed as a second input (no cos in-kernel).
    scale = _volume_scale(N, float(k))                      # (1, N) float32

    # Pipeline-buffer budget per lane column (conservative f32-equivalent
    # bound): {x_in, out} double-buffered at ceil(B/8)*8 sublane rows, plus the
    # (1, N) f32 scale double-buffered at 8 rows, 4 bytes each.
    rows_pad = ((B + 7) // 8) * 8
    bytes_per_col = 4 * (2 * rows_pad + 2 * rows_pad + 2 * 8)
    tn_max = max(128, (vmem_budget_bytes // bytes_per_col) // 128 * 128)
    # TN: multiple of 128 (lane-dense, unmasked stores); single block when the
    # whole row fits, otherwise ~24 MiB worth of buffers per step.
    TN = min(((N + 127) // 128) * 128, tn_max)
    grid = (pl.cdiv(N, TN),)
    # TODO(synk): a very large batch (B * 128 * 4 bytes > budget) would need an
    # additional row-tiling grid axis; LibriSpeech batches are tiny (B ~ 2).

    return pl.pallas_call(
        _scale_mul_kernel,
        out_shape=jax.ShapeDtypeStruct((B, N), x.dtype),
        grid=grid,
        in_specs=[
            pl.BlockSpec((B, TN), lambda i: (0, i)),   # waveform tile
            pl.BlockSpec((1, TN), lambda i: (0, i)),   # scale tile
        ],
        out_specs=pl.BlockSpec((B, TN), lambda i: (0, i)),
        compiler_params=pltpu.CompilerParams(
            dimension_semantics=("parallel",),
            vmem_limit_bytes=32 * 1024 * 1024,
        ),
    )(x, scale)


if __name__ == "__main__":
    key = jax.random.PRNGKey(0)
    k = 100000.0

    def reference(x, k):
        n = x.shape[1]
        scale = jnp.cos(jnp.arange(n, dtype=jnp.float32) / jnp.float32(k)) ** 2
        return x * scale

    # LibriSpeech-waveform-like shapes:
    #  (2, 16000): 1 s @ 16 kHz, lane-aligned, single full block.
    #  (2, 8192) : aligned, power of two.
    #  (3, 2000) : N not a multiple of 128 -> exercises the masked edge block.
    #  (1, 16384): single-row batch.
    for (B, N) in [(2, 16000), (2, 8192), (3, 2000), (1, 16384)]:
        key, sub = jax.random.split(key)
        x = jax.random.normal(sub, (B, N), dtype=jnp.float32)

        out = jax.block_until_ready(adjust_volumn(x, k=k))
        ref = reference(x, k)

        assert out.shape == (B, N) and out.dtype == jnp.float32
        assert jnp.allclose(out, ref, atol=1e-5, rtol=1e-5), f"mismatch at {(B, N)}"

    print("KERNEL_OK")
</pallas_src>

<mosaic_0001>
module attributes {stable_mosaic.version = 11 : i64} {
  func.func @_scale_mul_kernel(%arg0: i32, %arg1: memref<2x16000xf32, #tpu.memory_space<vmem>>, %arg2: memref<1x16000xf32, #tpu.memory_space<vmem>>, %arg3: memref<2x16000xf32, #tpu.memory_space<vmem>>) attributes {dimension_semantics = [#tpu.dimension_semantics<parallel>], iteration_bounds = array<i64: 1>, scalar_prefetch = 0 : i64, scratch_operands = 0 : i64, tpu.core_type = #tpu.core_type<tc>, window_params = [{transform_indices = @transform_0, window_bounds = array<i64: 2, 16000>}, {transform_indices = @transform_1, window_bounds = array<i64: 1, 16000>}, {transform_indices = @transform_2, window_bounds = array<i64: 2, 16000>}]} {
    %c0 = arith.constant 0 : index
    %c0_0 = arith.constant 0 : index
    %0 = vector.load %arg1[%c0, %c0_0] : memref<2x16000xf32, #tpu.memory_space<vmem>>, vector<2x16000xf32>
    %c0_1 = arith.constant 0 : index
    %c0_2 = arith.constant 0 : index
    %1 = vector.load %arg2[%c0_1, %c0_2] : memref<1x16000xf32, #tpu.memory_space<vmem>>, vector<1x16000xf32>
    %2 = vector.broadcast %1 : vector<1x16000xf32> to vector<2x16000xf32>
    %3 = arith.mulf %0, %2 : vector<2x16000xf32>
    %c0_3 = arith.constant 0 : index
    %c0_4 = arith.constant 0 : index
    %4 = vector.load %arg3[%c0_3, %c0_4] : memref<2x16000xf32, #tpu.memory_space<vmem>>, vector<2x16000xf32>
    tpu.vector_store %arg3[%c0_3, %c0_4], %3 {strides = array<i32>} : memref<2x16000xf32, #tpu.memory_space<vmem>>, vector<2x16000xf32>,
    return
  }
  func.func @transform_0(%arg0: i32) -> (i32, i32) {
    %c0_i32 = arith.constant 0 : i32
    %c0_i32_0 = arith.constant 0 : i32
    return %c0_i32, %arg0 : i32, i32
  }
  func.func @transform_1(%arg0: i32) -> (i32, i32) {
    %c0_i32 = arith.constant 0 : i32
    %c0_i32_0 = arith.constant 0 : i32
    return %c0_i32, %arg0 : i32, i32
  }
  func.func @transform_2(%arg0: i32) -> (i32, i32) {
    %c0_i32 = arith.constant 0 : i32
    %c0_i32_0 = arith.constant 0 : i32
    return %c0_i32, %arg0 : i32, i32
  }
}

</mosaic_0001>

<bundles_post_ra>
// kernel: tpu_custom_call.1
= control target key start
LH: loop header
LB: loop body
LE: loop exit
PB: predicated region body
PF: predicated region fallthrough
CT: control target
= control target key end

     0   :  { %7 = vsyncpa [#allocation3], 0  ;;  %s733_s0 = inlined_call_operand.hbm [shape: f32[2,16000], index: 0, kind: input, shape index: {}]   ;;  %s734_s1 = inlined_call_operand.hbm [shape: f32[1,16000], index: 1, kind: input, shape index: {}]   ;;  %s735_s2 = inlined_call_operand.hbm [shape: f32[2,16000], index: 2, kind: output, shape index: {}]  }
   0x1   :  { %8 = vsyncpa [#allocation6], 0 }
   0x2   :  { %9 = vsyncpa [#allocation4], 0  ;;  %s15_s11 = sshll.u32 %s733_s0, 4  ;;  %s613_s12 = smov [#allocation2]   ;;  %s16_s11 = int_to_ptr.hbm [resolvable:$true] %s15_s11 }
   0x3   :  { %s17_s13 = sshll.u32 %s613_s12, 4  ;;  %s26_s16 = sshll.u32 %s734_s1, 4  ;;  %s18_s13 = int_to_ptr.vmem [resolvable:$true] %s17_s13  ;;  %s27_s16 = int_to_ptr.hbm [resolvable:$true] %s26_s16 }
   0x4   :  { %20 = dma.hbm_to_vmem [thread:$0]  %s16_s11, 4000, %s18_s13, [#allocation3]  }
   0x5   :  { %s614_s17 = smov [#allocation5]  }
   0x6   :  { %s28_s18 = sshll.u32 %s614_s17, 4  ;;  %s29_s18 = int_to_ptr.vmem [resolvable:$true] %s28_s18 }
   0x7   :  { %31 = dma.hbm_to_vmem [thread:$0]  %s27_s16, 2000, %s29_s18, [#allocation6]  }
   0x8   :  { %607 = dma.done.wait [#allocation3], 4000  }
   0x9   :  { %608 = vsyncadd [#allocation3], 4294963296 }
   0xa   :  { %609 = dma.done.wait [#allocation6], 2000  }
   0xb   :  { %610 = vsyncadd [#allocation6], 4294965296  ;;  %v72_v0 = vld [vmem:[#allocation5] sm:$0xff]  ;;  %vm323_vm0 = vcmask 1041408   ;;  %vm325_vm1 = vcmask 1045508   ;;  %vm327_vm2 = vcmask 1043456  }
   0xc   :  { %v104_v1 = vperm.slane %v72_v0, 0  ;;  %v105_v2 = vperm.slane %v72_v0, 1  ;;  %v106_v3 = vperm.slane %v72_v0, 2  ;;  %v107_v4 = vperm.slane %v72_v0, 3  ;;  %v73_v5 = vld [vmem:[#allocation5 + $0x8] sm:$0xff]  ;;  %v74_v32 = vld [vmem:[#allocation5 + $0x10] sm:$0xff] }
   0xd   :  { %v108_v6 = vperm.slane %v72_v0, 4  ;;  %v109_v7 = vperm.slane %v72_v0, 5  ;;  %v110_v8 = vperm.slane %v72_v0, 6  ;;  %v111_v9 = vperm.slane %v72_v0, 7  ;;  %v40_v14 = vld [vmem:[#allocation2] sm:$0xff]  ;;  %v41_v21 = vld [vmem:[#allocation2 + $0x8] sm:$0xff] }
   0xe   :  { %v230_v10 = vrot.slane %v105_v2, 6  ;;  %v231_v11 = vrot.slane %v106_v3, 4  ;;  %v232_v12 = vrot.slane %v107_v4, 2  ;;  %v112_v13 = vperm.slane %v73_v5, 0  ;;  %v42_v34 = vld [vmem:[#allocation2 + $0x10] sm:$0xff]  ;;  %v43_v50 = vld [vmem:[#allocation2 + $0x18] sm:$0xff] }
   0xf   :  { %v233_v15 = vrot.slane %v109_v7, 6  ;;  %v234_v16 = vrot.slane %v110_v8, 4  ;;  %v235_v17 = vrot.slane %v111_v9, 2  ;;  %v113_v18 = vperm.slane %v73_v5, 1  ;;  %v75_v59 = vld [vmem:[#allocation5 + $0x18] sm:$0xff]  ;;  %v44_v61 = vld [vmem:[#allocation2 + $0x20] sm:$0xff] }
  0x10   :  { %v324_v19 = vsel %vm323_vm0, %v104_v1, %v230_v10  ;;  %v326_v20 = vsel %vm325_vm1, %v231_v11, %v232_v12  ;;  %v114_v22 = vperm.slane %v73_v5, 2  ;;  %v115_v23 = vperm.slane %v73_v5, 3  ;;  %v45_v10 = vld [vmem:[#allocation2 + $0x28] sm:$0xff]  ;;  %s615_s0 = smov [#allocation7]   ;;  %s521_s21 = sshll.u32 %s735_s2, 4  ;;  %s522_s21 = int_to_ptr.hbm [resolvable:$true] %s521_s21 }
  0x11   :  { %v328_v24 = vsel %vm327_vm2, %v324_v19, %v326_v20  ;;  %v329_v25 = vsel %vm323_vm0, %v108_v6, %v233_v15  ;;  %v330_v26 = vsel %vm325_vm1, %v234_v16, %v235_v17  ;;  %v236_v27 = vrot.slane %v113_v18, 6  ;;  %v76_v18 = vld [vmem:[#allocation5 + $0x20] sm:$0xff]  ;;  %s519_s1 = sshll.u32 %s615_s0, 4  ;;  %s520_s1 = int_to_ptr.vmem [resolvable:$true] %s519_s1 }
  0x12   :  { %v450_v28 = vmul.f32 %v328_v24, %v40_v14  ;;  %v331_v29 = vsel %vm327_vm2, %v329_v25, %v330_v26  ;;  %v237_v30 = vrot.slane %v114_v22, 4  ;;  %v238_v31 = vrot.slane %v115_v23, 2  ;;  %v46_v24 = vld [vmem:[#allocation2 + $0x30] sm:$0xff] }
  0x13   :  { %v451_v33 = vmul.f32 %v331_v29, %v41_v21  ;;  %v332_v35 = vsel %vm323_vm0, %v112_v13, %v236_v27  ;;  %v116_v36 = vperm.slane %v73_v5, 4  ;;  %v117_v37 = vperm.slane %v73_v5, 5 }
  0x14   :  { %482 = vst [vmem:[#allocation7] sm:$0xff] %v450_v28  ;;  %v333_v38 = vsel %vm325_vm1, %v237_v30, %v238_v31  ;;  %v118_v39 = vperm.slane %v73_v5, 6  ;;  %v119_v40 = vperm.slane %v73_v5, 7  ;;  %v120_v41 = vperm.slane %v74_v32, 0 }
  0x15   :  { %483 = vst [vmem:[#allocation7 + $0x8] sm:$0xff] %v451_v33  ;;  %v334_v42 = vsel %vm327_vm2, %v332_v35, %v333_v38  ;;  %v239_v43 = vrot.slane %v117_v37, 6  ;;  %v121_v44 = vperm.slane %v74_v32, 1  ;;  %v122_v45 = vperm.slane %v74_v32, 2  ;;  %v47_v33 = vld [vmem:[#allocation2 + $0x38] sm:$0xff] }
  0x16   :  { %v452_v46 = vmul.f32 %v334_v42, %v42_v34  ;;  %v240_v47 = vrot.slane %v118_v39, 4  ;;  %v241_v48 = vrot.slane %v119_v40, 2  ;;  %v123_v49 = vperm.slane %v74_v32, 3 }
  0x17   :  { %v335_v51 = vsel %vm323_vm0, %v116_v36, %v239_v43  ;;  %v242_v52 = vrot.slane %v121_v44, 6  ;;  %v243_v53 = vrot.slane %v122_v45, 4  ;;  %v124_v54 = vperm.slane %v74_v32, 4 }
  0x18   :  { %484 = vst [vmem:[#allocation7 + $0x10] sm:$0xff] %v452_v46  ;;  %v336_v55 = vsel %vm325_vm1, %v240_v47, %v241_v48  ;;  %v244_v56 = vrot.slane %v123_v49, 2  ;;  %v125_v57 = vperm.slane %v74_v32, 5  ;;  %v126_v58 = vperm.slane %v74_v32, 6  ;;  %v48_v47 = vld [vmem:[#allocation2 + $0x40] sm:$0xff] }
  0x19   :  { %v337_v60 = vsel %vm327_vm2, %v335_v51, %v336_v55  ;;  %v338_v62 = vsel %vm323_vm0, %v120_v41, %v242_v52  ;;  %v127_v63 = vperm.slane %v74_v32, 7  ;;  %v128_v0 = vperm.slane %v75_v59, 0  ;;  %v77_v41 = vld [vmem:[#allocation5 + $0x28] sm:$0xff] }
  0x1a   :  { %v453_v1 = vmul.f32 %v337_v60, %v43_v50  ;;  %v339_v2 = vsel %vm325_vm1, %v243_v53, %v244_v56  ;;  %v245_v3 = vrot.slane %v125_v57, 6  ;;  %v246_v4 = vrot.slane %v126_v58, 4  ;;  %v49_v60 = vld [vmem:[#allocation2 + $0x48] sm:$0xff] }
  0x1b   :  { %v340_v5 = vsel %vm327_vm2, %v338_v62, %v339_v2  ;;  %v247_v6 = vrot.slane %v127_v63, 2  ;;  %v129_v7 = vperm.slane %v75_v59, 1  ;;  %v130_v8 = vperm.slane %v75_v59, 2 }
  0x1c   :  { %485 = vst [vmem:[#allocation7 + $0x18] sm:$0xff] %v453_v1  ;;  %v454_v9 = vmul.f32 %v340_v5, %v44_v61  ;;  %v341_v11 = vsel %vm323_vm0, %v124_v54, %v245_v3  ;;  %v131_v12 = vperm.slane %v75_v59, 3  ;;  %v132_v13 = vperm.slane %v75_v59, 4 }
  0x1d   :  { %v342_v14 = vsel %vm325_vm1, %v246_v4, %v247_v6  ;;  %v248_v15 = vrot.slane %v129_v7, 6  ;;  %v249_v16 = vrot.slane %v130_v8, 4  ;;  %v133_v17 = vperm.slane %v75_v59, 5  ;;  %v78_v4 = vld [vmem:[#allocation5 + $0x30] sm:$0xff] }
  0x1e   :  { %486 = vst [vmem:[#allocation7 + $0x20] sm:$0xff] %v454_v9  ;;  %v343_v19 = vsel %vm327_vm2, %v341_v11, %v342_v14  ;;  %v250_v20 = vrot.slane %v131_v12, 2  ;;  %v134_v21 = vperm.slane %v75_v59, 6  ;;  %v135_v22 = vperm.slane %v75_v59, 7 }
  0x1f   :  { %v455_v23 = vmul.f32 %v343_v19, %v45_v10  ;;  %v344_v25 = vsel %vm323_vm0, %v128_v0, %v248_v15  ;;  %v251_v26 = vrot.slane %v133_v17, 6  ;;  %v136_v27 = vperm.slane %v76_v18, 0  ;;  %v50_v10 = vld [vmem:[#allocation2 + $0x50] sm:$0xff] }
  0x20   :  { %v345_v28 = vsel %vm325_vm1, %v249_v16, %v250_v20  ;;  %v252_v29 = vrot.slane %v134_v21, 4  ;;  %v253_v30 = vrot.slane %v135_v22, 2  ;;  %v137_v31 = vperm.slane %v76_v18, 1 }
  0x21   :  { %487 = vst [vmem:[#allocation7 + $0x28] sm:$0xff] %v455_v23  ;;  %v346_v32 = vsel %vm327_vm2, %v344_v25, %v345_v28  ;;  %v347_v34 = vsel %vm323_vm0, %v132_v13, %v251_v26  ;;  %v138_v35 = vperm.slane %v76_v18, 2  ;;  %v139_v36 = vperm.slane %v76_v18, 3  ;;  %v51_v23 = vld [vmem:[#allocation2 + $0x58] sm:$0xff] }
  0x22   :  { %v456_v37 = vmul.f32 %v346_v32, %v46_v24  ;;  %v348_v38 = vsel %vm325_vm1, %v252_v29, %v253_v30  ;;  %v254_v39 = vrot.slane %v137_v31, 6  ;;  %v140_v40 = vperm.slane %v76_v18, 4  ;;  %v79_v31 = vld [vmem:[#allocation5 + $0x38] sm:$0xff] }
  0x23   :  { %v349_v42 = vsel %vm327_vm2, %v347_v34, %v348_v38  ;;  %v255_v43 = vrot.slane %v138_v35, 4  ;;  %v256_v44 = vrot.slane %v139_v36, 2  ;;  %v141_v45 = vperm.slane %v76_v18, 5 }
  0x24   :  { %488 = vst [vmem:[#allocation7 + $0x30] sm:$0xff] %v456_v37  ;;  %v457_v46 = vmul.f32 %v349_v42, %v47_v33  ;;  %v350_v48 = vsel %vm323_vm0, %v136_v27, %v254_v39  ;;  %v142_v49 = vperm.slane %v76_v18, 6  ;;  %v143_v50 = vperm.slane %v76_v18, 7  ;;  %v52_v33 = vld [vmem:[#allocation2 + $0x60] sm:$0xff] }
  0x25   :  { %v351_v51 = vsel %vm325_vm1, %v255_v43, %v256_v44  ;;  %v257_v52 = vrot.slane %v141_v45, 6  ;;  %v144_v53 = vperm.slane %v77_v41, 0  ;;  %v145_v54 = vperm.slane %v77_v41, 1 }
  0x26   :  { %489 = vst [vmem:[#allocation7 + $0x38] sm:$0xff] %v457_v46  ;;  %v352_v55 = vsel %vm327_vm2, %v350_v48, %v351_v51  ;;  %v258_v56 = vrot.slane %v142_v49, 4  ;;  %v259_v57 = vrot.slane %v143_v50, 2  ;;  %v146_v58 = vperm.slane %v77_v41, 2  ;;  %v53_v46 = vld [vmem:[#allocation2 + $0x68] sm:$0xff] }
  0x27   :  { %v458_v59 = vmul.f32 %v352_v55, %v48_v47  ;;  %v353_v61 = vsel %vm323_vm0, %v140_v40, %v257_v52  ;;  %v147_v62 = vperm.slane %v77_v41, 3  ;;  %v260_v63 = vrot.slane %v145_v54, 6  ;;  %v80_v54 = vld [vmem:[#allocation5 + $0x40] sm:$0xff] }
  0x28   :  { %v354_v0 = vsel %vm325_vm1, %v258_v56, %v259_v57  ;;  %v261_v1 = vrot.slane %v146_v58, 4  ;;  %v148_v2 = vperm.slane %v77_v41, 4  ;;  %v149_v3 = vperm.slane %v77_v41, 5 }
  0x29   :  { %490 = vst [vmem:[#allocation7 + $0x40] sm:$0xff] %v458_v59  ;;  %v355_v5 = vsel %vm327_vm2, %v353_v61, %v354_v0  ;;  %v262_v6 = vrot.slane %v147_v62, 2  ;;  %v356_v7 = vsel %vm323_vm0, %v144_v53, %v260_v63  ;;  %v150_v8 = vperm.slane %v77_v41, 6 }
  0x2a   :  { %v459_v9 = vmul.f32 %v355_v5, %v49_v60  ;;  %v151_v11 = vperm.slane %v77_v41, 7  ;;  %v263_v12 = vrot.slane %v149_v3, 6  ;;  %v152_v13 = vperm.slane %v78_v4, 0  ;;  %v54_v60 = vld [vmem:[#allocation2 + $0x70] sm:$0xff]  ;;  %v55_v5 = vld [vmem:[#allocation2 + $0x78] sm:$0xff] }
  0x2b   :  { %v357_v14 = vsel %vm325_vm1, %v261_v1, %v262_v6  ;;  %v264_v15 = vrot.slane %v150_v8, 4  ;;  %v153_v16 = vperm.slane %v78_v4, 1  ;;  %v154_v17 = vperm.slane %v78_v4, 2 }
  0x2c   :  { %491 = vst [vmem:[#allocation7 + $0x48] sm:$0xff] %v459_v9  ;;  %v358_v18 = vsel %vm327_vm2, %v356_v7, %v357_v14  ;;  %v265_v19 = vrot.slane %v151_v11, 2  ;;  %v359_v20 = vsel %vm323_vm0, %v148_v2, %v263_v12  ;;  %v155_v21 = vperm.slane %v78_v4, 3 }
  0x2d   :  { %v460_v22 = vmul.f32 %v358_v18, %v50_v10  ;;  %v266_v24 = vrot.slane %v153_v16, 6  ;;  %v267_v25 = vrot.slane %v154_v17, 4  ;;  %v156_v26 = vperm.slane %v78_v4, 4 }
  0x2e   :  { %v360_v27 = vsel %vm325_vm1, %v264_v15, %v265_v19  ;;  %v268_v28 = vrot.slane %v155_v21, 2  ;;  %v157_v29 = vperm.slane %v78_v4, 5  ;;  %v158_v30 = vperm.slane %v78_v4, 6  ;;  %v56_v19 = vld [vmem:[#allocation2 + $0x80] sm:$0xff] }
  0x2f   :  { %492 = vst [vmem:[#allocation7 + $0x50] sm:$0xff] %v460_v22  ;;  %v361_v32 = vsel %vm327_vm2, %v359_v20, %v360_v27  ;;  %v362_v34 = vsel %vm323_vm0, %v152_v13, %v266_v24  ;;  %v159_v35 = vperm.slane %v78_v4, 7  ;;  %v160_v36 = vperm.slane %v79_v31, 0  ;;  %v81_v13 = vld [vmem:[#allocation5 + $0x48] sm:$0xff] }
  0x30   :  { %v461_v37 = vmul.f32 %v361_v32, %v51_v23  ;;  %v363_v38 = vsel %vm325_vm1, %v267_v25, %v268_v28  ;;  %v269_v39 = vrot.slane %v157_v29, 6  ;;  %v270_v40 = vrot.slane %v158_v30, 4  ;;  %v57_v32 = vld [vmem:[#allocation2 + $0x88] sm:$0xff] }
  0x31   :  { %v364_v41 = vsel %vm327_vm2, %v362_v34, %v363_v38  ;;  %v271_v42 = vrot.slane %v159_v35, 2  ;;  %v161_v43 = vperm.slane %v79_v31, 1  ;;  %v162_v44 = vperm.slane %v79_v31, 2 }
  0x32   :  { %493 = vst [vmem:[#allocation7 + $0x58] sm:$0xff] %v461_v37  ;;  %v462_v45 = vmul.f32 %v364_v41, %v52_v33  ;;  %v365_v47 = vsel %vm323_vm0, %v156_v26, %v269_v39  ;;  %v163_v48 = vperm.slane %v79_v31, 3  ;;  %v164_v49 = vperm.slane %v79_v31, 4 }
  0x33   :  { %v366_v50 = vsel %vm325_vm1, %v270_v40, %v271_v42  ;;  %v272_v51 = vrot.slane %v161_v43, 6  ;;  %v273_v52 = vrot.slane %v162_v44, 4  ;;  %v165_v53 = vperm.slane %v79_v31, 5  ;;  %v82_v40 = vld [vmem:[#allocation5 + $0x50] sm:$0xff] }
  0x34   :  { %494 = vst [vmem:[#allocation7 + $0x60] sm:$0xff] %v462_v45  ;;  %v367_v55 = vsel %vm327_vm2, %v365_v47, %v366_v50  ;;  %v274_v56 = vrot.slane %v163_v48, 2  ;;  %v166_v57 = vperm.slane %v79_v31, 6  ;;  %v167_v58 = vperm.slane %v79_v31, 7 }
  0x35   :  { %v463_v59 = vmul.f32 %v367_v55, %v53_v46  ;;  %v368_v61 = vsel %vm323_vm0, %v160_v36, %v272_v51  ;;  %v275_v62 = vrot.slane %v165_v53, 6  ;;  %v168_v63 = vperm.slane %v80_v54, 0  ;;  %v58_v46 = vld [vmem:[#allocation2 + $0x90] sm:$0xff] }
  0x36   :  { %v369_v0 = vsel %vm325_vm1, %v273_v52, %v274_v56  ;;  %v276_v1 = vrot.slane %v166_v57, 4  ;;  %v277_v2 = vrot.slane %v167_v58, 2  ;;  %v169_v3 = vperm.slane %v80_v54, 1 }
  0x37   :  { %495 = vst [vmem:[#allocation7 + $0x68] sm:$0xff] %v463_v59  ;;  %v370_v4 = vsel %vm327_vm2, %v368_v61, %v369_v0  ;;  %v371_v6 = vsel %vm323_vm0, %v164_v49, %v275_v62  ;;  %v170_v7 = vperm.slane %v80_v54, 2  ;;  %v171_v8 = vperm.slane %v80_v54, 3  ;;  %v59_v59 = vld [vmem:[#allocation2 + $0x98] sm:$0xff] }
  0x38   :  { %v464_v9 = vmul.f32 %v370_v4, %v54_v60  ;;  %v372_v10 = vsel %vm325_vm1, %v276_v1, %v277_v2  ;;  %v278_v11 = vrot.slane %v169_v3, 6  ;;  %v172_v12 = vperm.slane %v80_v54, 4  ;;  %v83_v3 = vld [vmem:[#allocation5 + $0x58] sm:$0xff] }
  0x39   :  { %v373_v14 = vsel %vm327_vm2, %v371_v6, %v372_v10  ;;  %v279_v15 = vrot.slane %v170_v7, 4  ;;  %v280_v16 = vrot.slane %v171_v8, 2  ;;  %v173_v17 = vperm.slane %v80_v54, 5 }
  0x3a   :  { %496 = vst [vmem:[#allocation7 + $0x70] sm:$0xff] %v464_v9  ;;  %v465_v18 = vmul.f32 %v373_v14, %v55_v5  ;;  %v374_v20 = vsel %vm323_vm0, %v168_v63, %v278_v11  ;;  %v174_v21 = vperm.slane %v80_v54, 6  ;;  %v175_v22 = vperm.slane %v80_v54, 7  ;;  %v60_v5 = vld [vmem:[#allocation2 + $0xa0] sm:$0xff] }
  0x3b   :  { %v375_v23 = vsel %vm325_vm1, %v279_v15, %v280_v16  ;;  %v281_v24 = vrot.slane %v173_v17, 6  ;;  %v176_v25 = vperm.slane %v81_v13, 0  ;;  %v177_v26 = vperm.slane %v81_v13, 1 }
  0x3c   :  { %497 = vst [vmem:[#allocation7 + $0x78] sm:$0xff] %v465_v18  ;;  %v376_v27 = vsel %vm327_vm2, %v374_v20, %v375_v23  ;;  %v282_v28 = vrot.slane %v174_v21, 4  ;;  %v283_v29 = vrot.slane %v175_v22, 2  ;;  %v178_v30 = vperm.slane %v81_v13, 2  ;;  %v61_v18 = vld [vmem:[#allocation2 + $0xa8] sm:$0xff] }
  0x3d   :  { %v466_v31 = vmul.f32 %v376_v27, %v56_v19  ;;  %v377_v33 = vsel %vm323_vm0, %v172_v12, %v281_v24  ;;  %v179_v34 = vperm.slane %v81_v13, 3  ;;  %v284_v35 = vrot.slane %v177_v26, 6  ;;  %v84_v26 = vld [vmem:[#allocation5 + $0x60] sm:$0xff] }
  0x3e   :  { %v378_v36 = vsel %vm325_vm1, %v282_v28, %v283_v29  ;;  %v285_v37 = vrot.slane %v178_v30, 4  ;;  %v180_v38 = vperm.slane %v81_v13, 4  ;;  %v181_v39 = vperm.slane %v81_v13, 5 }
  0x3f   :  { %498 = vst [vmem:[#allocation7 + $0x80] sm:$0xff] %v466_v31  ;;  %v379_v41 = vsel %vm327_vm2, %v377_v33, %v378_v36  ;;  %v286_v42 = vrot.slane %v179_v34, 2  ;;  %v380_v43 = vsel %vm323_vm0, %v176_v25, %v284_v35  ;;  %v182_v44 = vperm.slane %v81_v13, 6 }
  0x40   :  { %v467_v45 = vmul.f32 %v379_v41, %v57_v32  ;;  %v183_v47 = vperm.slane %v81_v13, 7  ;;  %v287_v48 = vrot.slane %v181_v39, 6  ;;  %v184_v49 = vperm.slane %v82_v40, 0  ;;  %v62_v32 = vld [vmem:[#allocation2 + $0xb0] sm:$0xff]  ;;  %v63_v41 = vld [vmem:[#allocation2 + $0xb8] sm:$0xff] }
  0x41   :  { %v381_v50 = vsel %vm325_vm1, %v285_v37, %v286_v42  ;;  %v288_v51 = vrot.slane %v182_v44, 4  ;;  %v185_v52 = vperm.slane %v82_v40, 1  ;;  %v186_v53 = vperm.slane %v82_v40, 2 }
  0x42   :  { %499 = vst [vmem:[#allocation7 + $0x88] sm:$0xff] %v467_v45  ;;  %v382_v54 = vsel %vm327_vm2, %v380_v43, %v381_v50  ;;  %v289_v55 = vrot.slane %v183_v47, 2  ;;  %v383_v56 = vsel %vm323_vm0, %v180_v38, %v287_v48  ;;  %v187_v57 = vperm.slane %v82_v40, 3 }
  0x43   :  { %v468_v58 = vmul.f32 %v382_v54, %v58_v46  ;;  %v290_v60 = vrot.slane %v185_v52, 6  ;;  %v291_v61 = vrot.slane %v186_v53, 4  ;;  %v188_v62 = vperm.slane %v82_v40, 4 }
  0x44   :  { %v384_v63 = vsel %vm325_vm1, %v288_v51, %v289_v55  ;;  %v292_v0 = vrot.slane %v187_v57, 2  ;;  %v189_v1 = vperm.slane %v82_v40, 5  ;;  %v190_v2 = vperm.slane %v82_v40, 6  ;;  %v64_v55 = vld [vmem:[#allocation2 + $0xc0] sm:$0xff] }
  0x45   :  { %500 = vst [vmem:[#allocation7 + $0x90] sm:$0xff] %v468_v58  ;;  %v385_v4 = vsel %vm327_vm2, %v383_v56, %v384_v63  ;;  %v386_v6 = vsel %vm323_vm0, %v184_v49, %v290_v60  ;;  %v191_v7 = vperm.slane %v82_v40, 7  ;;  %v192_v8 = vperm.slane %v83_v3, 0  ;;  %v85_v49 = vld [vmem:[#allocation5 + $0x68] sm:$0xff] }
  0x46   :  { %v469_v9 = vmul.f32 %v385_v4, %v59_v59  ;;  %v387_v10 = vsel %vm325_vm1, %v291_v61, %v292_v0  ;;  %v293_v11 = vrot.slane %v189_v1, 6  ;;  %v294_v12 = vrot.slane %v190_v2, 4  ;;  %v65_v4 = vld [vmem:[#allocation2 + $0xc8] sm:$0xff] }
  0x47   :  { %v388_v13 = vsel %vm327_vm2, %v386_v6, %v387_v10  ;;  %v295_v14 = vrot.slane %v191_v7, 2  ;;  %v193_v15 = vperm.slane %v83_v3, 1  ;;  %v194_v16 = vperm.slane %v83_v3, 2 }
  0x48   :  { %501 = vst [vmem:[#allocation7 + $0x98] sm:$0xff] %v469_v9  ;;  %v470_v17 = vmul.f32 %v388_v13, %v60_v5  ;;  %v389_v19 = vsel %vm323_vm0, %v188_v62, %v293_v11  ;;  %v195_v20 = vperm.slane %v83_v3, 3  ;;  %v196_v21 = vperm.slane %v83_v3, 4 }
  0x49   :  { %v390_v22 = vsel %vm325_vm1, %v294_v12, %v295_v14  ;;  %v296_v23 = vrot.slane %v193_v15, 6  ;;  %v297_v24 = vrot.slane %v194_v16, 4  ;;  %v197_v25 = vperm.slane %v83_v3, 5  ;;  %v86_v12 = vld [vmem:[#allocation5 + $0x70] sm:$0xff] }
  0x4a   :  { %502 = vst [vmem:[#allocation7 + $0xa0] sm:$0xff] %v470_v17  ;;  %v391_v27 = vsel %vm327_vm2, %v389_v19, %v390_v22  ;;  %v298_v28 = vrot.slane %v195_v20, 2  ;;  %v198_v29 = vperm.slane %v83_v3, 6  ;;  %v199_v30 = vperm.slane %v83_v3, 7 }
  0x4b   :  { %v471_v31 = vmul.f32 %v391_v27, %v61_v18  ;;  %v392_v33 = vsel %vm323_vm0, %v192_v8, %v296_v23  ;;  %v299_v34 = vrot.slane %v197_v25, 6  ;;  %v200_v35 = vperm.slane %v84_v26, 0  ;;  %v66_v18 = vld [vmem:[#allocation2 + $0xd0] sm:$0xff] }
  0x4c   :  { %v393_v36 = vsel %vm325_vm1, %v297_v24, %v298_v28  ;;  %v300_v37 = vrot.slane %v198_v29, 4  ;;  %v301_v38 = vrot.slane %v199_v30, 2  ;;  %v201_v39 = vperm.slane %v84_v26, 1 }
  0x4d   :  { %503 = vst [vmem:[#allocation7 + $0xa8] sm:$0xff] %v471_v31  ;;  %v394_v40 = vsel %vm327_vm2, %v392_v33, %v393_v36  ;;  %v395_v42 = vsel %vm323_vm0, %v196_v21, %v299_v34  ;;  %v202_v43 = vperm.slane %v84_v26, 2  ;;  %v203_v44 = vperm.slane %v84_v26, 3  ;;  %v67_v31 = vld [vmem:[#allocation2 + $0xd8] sm:$0xff] }
  0x4e   :  { %v472_v45 = vmul.f32 %v394_v40, %v62_v32  ;;  %v396_v46 = vsel %vm325_vm1, %v300_v37, %v301_v38  ;;  %v302_v47 = vrot.slane %v201_v39, 6  ;;  %v204_v48 = vperm.slane %v84_v26, 4  ;;  %v87_v39 = vld [vmem:[#allocation5 + $0x78] sm:$0x1f] }
  0x4f   :  { %v397_v50 = vsel %vm327_vm2, %v395_v42, %v396_v46  ;;  %v303_v51 = vrot.slane %v202_v43, 4  ;;  %v304_v52 = vrot.slane %v203_v44, 2  ;;  %v205_v53 = vperm.slane %v84_v26, 5 }
  0x50   :  { %504 = vst [vmem:[#allocation7 + $0xb0] sm:$0xff] %v472_v45  ;;  %v473_v54 = vmul.f32 %v397_v50, %v63_v41  ;;  %v398_v56 = vsel %vm323_vm0, %v200_v35, %v302_v47  ;;  %v206_v57 = vperm.slane %v84_v26, 6  ;;  %v207_v58 = vperm.slane %v84_v26, 7  ;;  %v68_v41 = vld [vmem:[#allocation2 + $0xe0] sm:$0xff] }
  0x51   :  { %v399_v59 = vsel %vm325_vm1, %v303_v51, %v304_v52  ;;  %v305_v60 = vrot.slane %v205_v53, 6  ;;  %v208_v61 = vperm.slane %v85_v49, 0  ;;  %v209_v62 = vperm.slane %v85_v49, 1  ;;  %v71_v53 = vld [vmem:[#allocation2 + $0xf8] sm:$0x3] }
  0x52   :  { %505 = vst [vmem:[#allocation7 + $0xb8] sm:$0xff] %v473_v54  ;;  %v400_v63 = vsel %vm327_vm2, %v398_v56, %v399_v59  ;;  %v306_v0 = vrot.slane %v206_v57, 4  ;;  %v307_v1 = vrot.slane %v207_v58, 2  ;;  %v210_v2 = vperm.slane %v85_v49, 2 }
  0x53   :  { %v474_v3 = vmul.f32 %v400_v63, %v64_v55  ;;  %v401_v5 = vsel %vm323_vm0, %v204_v48, %v305_v60  ;;  %v211_v6 = vperm.slane %v85_v49, 3  ;;  %v308_v7 = vrot.slane %v209_v62, 6  ;;  %v69_v55 = vld [vmem:[#allocation2 + $0xe8] sm:$0xff] }
  0x54   :  { %v402_v8 = vsel %vm325_vm1, %v306_v0, %v307_v1  ;;  %v309_v9 = vrot.slane %v210_v2, 4  ;;  %v212_v10 = vperm.slane %v85_v49, 4  ;;  %v213_v11 = vperm.slane %v85_v49, 5  ;;  %v70_v2 = vld [vmem:[#allocation2 + $0xf0] sm:$0xff] }
  0x55   :  { %506 = vst [vmem:[#allocation7 + $0xc0] sm:$0xff] %v474_v3  ;;  %v403_v13 = vsel %vm327_vm2, %v401_v5, %v402_v8  ;;  %v310_v14 = vrot.slane %v211_v6, 2  ;;  %v404_v15 = vsel %vm323_vm0, %v208_v61, %v308_v7  ;;  %v214_v16 = vperm.slane %v85_v49, 6 }
  0x56   :  { %v475_v17 = vmul.f32 %v403_v13, %v65_v4  ;;  %v215_v19 = vperm.slane %v85_v49, 7  ;;  %v311_v20 = vrot.slane %v213_v11, 6  ;;  %v216_v21 = vperm.slane %v86_v12, 0 }
  0x57   :  { %v405_v22 = vsel %vm325_vm1, %v309_v9, %v310_v14  ;;  %v312_v23 = vrot.slane %v214_v16, 4  ;;  %v217_v24 = vperm.slane %v86_v12, 1  ;;  %v218_v25 = vperm.slane %v86_v12, 2 }
  0x58   :  { %507 = vst [vmem:[#allocation7 + $0xc8] sm:$0xff] %v475_v17  ;;  %v406_v26 = vsel %vm327_vm2, %v404_v15, %v405_v22  ;;  %v313_v27 = vrot.slane %v215_v19, 2  ;;  %v407_v28 = vsel %vm323_vm0, %v212_v10, %v311_v20  ;;  %v219_v29 = vperm.slane %v86_v12, 3 }
  0x59   :  { %v476_v30 = vmul.f32 %v406_v26, %v66_v18  ;;  %v314_v32 = vrot.slane %v217_v24, 6  ;;  %v315_v33 = vrot.slane %v218_v25, 4  ;;  %v220_v34 = vperm.slane %v86_v12, 4 }
  0x5a   :  { %v408_v35 = vsel %vm325_vm1, %v312_v23, %v313_v27  ;;  %v316_v36 = vrot.slane %v219_v29, 2  ;;  %v221_v37 = vperm.slane %v86_v12, 5  ;;  %v222_v38 = vperm.slane %v86_v12, 6 }
  0x5b   :  { %508 = vst [vmem:[#allocation7 + $0xd0] sm:$0xff] %v476_v30  ;;  %v409_v40 = vsel %vm327_vm2, %v407_v28, %v408_v35  ;;  %v410_v42 = vsel %vm323_vm0, %v216_v21, %v314_v32  ;;  %v223_v43 = vperm.slane %v86_v12, 7  ;;  %v224_v44 = vperm.slane %v87_v39, 0 }
  0x5c   :  { %v477_v45 = vmul.f32 %v409_v40, %v67_v31  ;;  %v411_v46 = vsel %vm325_vm1, %v315_v33, %v316_v36  ;;  %v317_v47 = vrot.slane %v221_v37, 6  ;;  %v318_v48 = vrot.slane %v222_v38, 4 }
  0x5d   :  { %v412_v49 = vsel %vm327_vm2, %v410_v42, %v411_v46  ;;  %v319_v50 = vrot.slane %v223_v43, 2  ;;  %v225_v51 = vperm.slane %v87_v39, 1  ;;  %v226_v52 = vperm.slane %v87_v39, 2 }
  0x5e   :  { %509 = vst [vmem:[#allocation7 + $0xd8] sm:$0xff] %v477_v45  ;;  %v478_v54 = vmul.f32 %v412_v49, %v68_v41  ;;  %v413_v56 = vsel %vm323_vm0, %v220_v34, %v317_v47  ;;  %v227_v57 = vperm.slane %v87_v39, 3  ;;  %v228_v58 = vperm.slane %v87_v39, 4 }
  0x5f   :  { %v414_v59 = vsel %vm325_vm1, %v318_v48, %v319_v50  ;;  %v320_v60 = vrot.slane %v225_v51, 6  ;;  %v321_v61 = vrot.slane %v226_v52, 4 }
  0x60   :  { %510 = vst [vmem:[#allocation7 + $0xe0] sm:$0xff] %v478_v54  ;;  %v415_v62 = vsel %vm327_vm2, %v413_v56, %v414_v59  ;;  %v322_v63 = vrot.slane %v227_v57, 2  ;;  %v481_v0 = vmul.f32 %v228_v58, %v71_v53 }
  0x61   :  { %v479_v1 = vmul.f32 %v415_v62, %v69_v55  ;;  %v416_v3 = vsel %vm323_vm0, %v224_v44, %v320_v60 }
  0x62   :  { %v417_v4 = vsel %vm325_vm1, %v321_v61, %v322_v63  ;;  %513 = vst [vmem:[#allocation7 + $0xf8] sm:$0x3] %v481_v0 }
  0x63   :  { %511 = vst [vmem:[#allocation7 + $0xe8] sm:$0xff] %v479_v1  ;;  %v418_v5 = vsel %vm327_vm2, %v416_v3, %v417_v4 }
  0x64   :  { %v480_v6 = vmul.f32 %v418_v5, %v70_v2 }
  0x66   :  { %512 = vst [vmem:[#allocation7 + $0xf0] sm:$0xff] %v480_v6 }
  0x67   :  { %524 = dma.vmem_to_hbm [thread:$0]  %s520_s1, 4000, %s522_s21, [#allocation4]  }
  0x68   :  { %611 = dma.done.wait [#allocation4], 4000  }
  0x69   :  { %612 = vsyncadd [#allocation4], 4294963296 }
  0x6a   :  { %529 = vsyncpa [#allocation3], 1 }
  0x6b   :  { %530 = vsyncpa [#allocation6], 1 }
  0x6c   :  { %531 = vsyncpa [#allocation4], 1 }

</bundles_post_ra>
